<compile_context>
chip_gen: v7x
topology: tpu7x:2x2x1
jax: 0.10.0
libtpu: 0.0.40
codegen_flags: <defaults>
</compile_context>

<pallas_src>
import functools

import jax
import jax.numpy as jnp
from jax.experimental import pallas as pl
from jax.experimental.pallas import tpu as pltpu

GN_EPS = 1e-5    # GraphNorm's own eps (PyG default)
MLP_EPS = 1e-5   # the `+ eps` added after ReLU in MLP.forward


def _mlp_fused_kernel(x_ref, w_ref, v_ref, o_ref, *, num_hidden, c_in, c_out,
                      gn_eps, mlp_eps):
    """One graph per grid step.

    x_ref: (1, N, c_in)   f32
    w_ref: (L, CP, CP)    f32, zero-padded; rows >= real c_in are zero (invariant above)
    v_ref: (L, 8, CP)     rows: 0=bias, 1=gamma, 2=beta, 3=mean_scale, 4-7 zero
    o_ref: (1, N, c_out)
    """
    cp = w_ref.shape[1]
    h = x_ref[0]                                   # (N, c_in) f32

    # Hidden layers: Linear + GraphNorm + ReLU + eps, chained entirely in VMEM.
    for l in range(num_hidden):                    # static, tiny trip count
        k_dim = c_in if l == 0 else cp
        w = w_ref[l, 0:k_dim, :]                   # (k_dim, CP)
        vec = v_ref[l]                             # (8, CP)
        b, gamma, beta, mscale = vec[0:1, :], vec[1:2, :], vec[2:3, :], vec[3:4, :]

        z = jnp.dot(h, w, preferred_element_type=jnp.float32) + b     # MXU, f32

        # One-pass GraphNorm statistics (both reductions on the XLU, f32).
        mean = jnp.mean(z, axis=0, keepdims=True)                      # (1, CP)
        mean_sq = jnp.mean(z * z, axis=0, keepdims=True)               # (1, CP)
        var = mean_sq - mscale * (2.0 - mscale) * (mean * mean)
        out = z - mean * mscale
        inv_std = jax.lax.rsqrt(var + gn_eps)                          # EUP
        y = gamma * out * inv_std + beta
        h = jnp.maximum(y, 0.0) + mlp_eps

    # Final plain Linear; write the real columns straight to the output tile.
    k_dim = c_in if num_hidden == 0 else cp
    w_last = w_ref[num_hidden, 0:k_dim, :]
    b_last = v_ref[num_hidden, 0:1, :]
    z = jnp.dot(h, w_last, preferred_element_type=jnp.float32) + b_last
    o_ref[0] = z[:, 0:c_out]


def pack_mlp_params(params):
    """Stack per-layer weights into (L, CP, CP) and the per-layer vectors
    (bias/gamma/beta/mean_scale) into (L, 8, CP) sublane tiles, with
    CP = max channel rounded up to a multiple of 8 (f32 sublane)."""
    c_max = max(max(layer["w_t"].shape) for layer in params)
    cp = ((c_max + 7) // 8) * 8
    w_stack, v_stack = [], []
    for layer in params:
        w_t = layer["w_t"]                         # (c_in, c_out)
        ci, co = w_t.shape
        # Rows >= ci stay zero: padding columns of the previous activation are inert.
        w_p = jnp.zeros((cp, cp), jnp.float32).at[:ci, :co].set(w_t)
        vec = jnp.zeros((8, cp), jnp.float32)
        vec = vec.at[0, :co].set(layer["b"])
        if "gamma" in layer:
            vec = vec.at[1, :co].set(layer["gamma"])
            vec = vec.at[2, :co].set(layer["beta"])
            vec = vec.at[3, :co].set(layer["mean_scale"])
        w_stack.append(w_p)
        v_stack.append(vec)
    return jnp.stack(w_stack), jnp.stack(v_stack)


@functools.partial(jax.jit, static_argnames=("num_hidden", "c_in", "c_out"))
def mlp_forward_fused(x, w_stack, v_stack, *, num_hidden, c_in, c_out):
    """x: (B, N, c_in) -- B independent graphs, each normalized over its own N rows."""
    B, N, _ = x.shape
    L, cp, _ = w_stack.shape

    kernel = functools.partial(_mlp_fused_kernel, num_hidden=num_hidden,
                               c_in=c_in, c_out=c_out,
                               gn_eps=GN_EPS, mlp_eps=MLP_EPS)
    return pl.pallas_call(
        kernel,
        out_shape=jax.ShapeDtypeStruct((B, N, c_out), jnp.float32),
        grid=(B,),
        in_specs=[
            pl.BlockSpec((1, N, c_in), lambda b: (b, 0, 0)),   # per-graph tile
            pl.BlockSpec((L, cp, cp), lambda b: (0, 0, 0)),    # weights: VMEM-resident
            pl.BlockSpec((L, 8, cp), lambda b: (0, 0, 0)),     # vectors: VMEM-resident
        ],
        out_specs=pl.BlockSpec((1, N, c_out), lambda b: (b, 0, 0)),
        compiler_params=pltpu.CompilerParams(
            dimension_semantics=("parallel",)),                # v7x: shard graphs over TCs
    )(x, w_stack, v_stack)


def init_mlp_params(key, channels):
    """Deterministic params. Linear: torch-like uniform(-1/sqrt(fan_in), 1/sqrt(fan_in)).
    GraphNorm: weight=1, bias=0, mean_scale=1 (PyG defaults)."""
    params = []
    for i in range(1, len(channels)):
        c_in, c_out = channels[i - 1], channels[i]
        key, kw, kb = jax.random.split(key, 3)
        bound = 1.0 / jnp.sqrt(float(c_in))
        w = jax.random.uniform(kw, (c_out, c_in), jnp.float32, -bound, bound)
        b = jax.random.uniform(kb, (c_out,), jnp.float32, -bound, bound)
        layer = {"w_t": w.T, "b": b}  # pre-transposed for row-major matmul
        if i < len(channels) - 1:
            layer["gamma"] = jnp.ones((c_out,), jnp.float32)
            layer["beta"] = jnp.zeros((c_out,), jnp.float32)
            layer["mean_scale"] = jnp.ones((c_out,), jnp.float32)
        params.append(layer)
    return params


def mlp_reference(params, x):
    """Pure-JAX reference of the torch module's semantics for ONE graph (N, c_in)."""
    for layer in params[:-1]:
        h = x @ layer["w_t"] + layer["b"]
        mean = jnp.mean(h, axis=0, keepdims=True)
        out = h - mean * layer["mean_scale"]
        var = jnp.mean(out * out, axis=0, keepdims=True)
        y = layer["gamma"] * out / jnp.sqrt(var + GN_EPS) + layer["beta"]
        x = jnp.maximum(y, 0.0) + MLP_EPS
    last = params[-1]
    return x @ last["w_t"] + last["b"]


if __name__ == "__main__":
    channels = [16, 32, 32, 8]   # MLP(channels=[16, 32, 32, 8], bias=True, norm='graph')
    B, N = 2, 32                 # B independent graphs, N nodes each

    key = jax.random.PRNGKey(0)
    key, kx = jax.random.split(key)
    x = jax.random.normal(kx, (B, N, channels[0]), jnp.float32)

    params = init_mlp_params(key, channels)
    w_stack, v_stack = pack_mlp_params(params)

    out = mlp_forward_fused(x, w_stack, v_stack,
                            num_hidden=len(channels) - 2,
                            c_in=channels[0], c_out=channels[-1])
    out = jax.block_until_ready(out)

    ref = jax.vmap(lambda xb: mlp_reference(params, xb))(x)
    assert out.shape == (B, N, channels[-1])
    assert jnp.allclose(out, ref, atol=1e-4, rtol=1e-4), "mismatch vs reference"

    print("KERNEL_OK")
</pallas_src>

<mosaic_0001>
module attributes {stable_mosaic.version = 11 : i64} {
  func.func @_mlp_fused_kernel(%arg0: i32, %arg1: memref<1x32x16xf32, #tpu.memory_space<vmem>>, %arg2: memref<3x32x32xf32, #tpu.memory_space<vmem>>, %arg3: memref<3x8x32xf32, #tpu.memory_space<vmem>>, %arg4: memref<1x32x8xf32, #tpu.memory_space<vmem>>) attributes {dimension_semantics = [#tpu.dimension_semantics<parallel>], iteration_bounds = array<i64: 2>, scalar_prefetch = 0 : i64, scratch_operands = 0 : i64, tpu.core_type = #tpu.core_type<tc>, window_params = [{transform_indices = @transform_0, window_bounds = array<i64: 1, 32, 16>}, {pipeline_mode = #tpu.pipeline_mode<synchronous>, transform_indices = @transform_1, window_bounds = array<i64: 3, 32, 32>}, {pipeline_mode = #tpu.pipeline_mode<synchronous>, transform_indices = @transform_2, window_bounds = array<i64: 3, 8, 32>}, {transform_indices = @transform_3, window_bounds = array<i64: 1, 32, 8>}]} {
    %c0 = arith.constant 0 : index
    %c0_0 = arith.constant 0 : index
    %c0_1 = arith.constant 0 : index
    %0 = vector.load %arg1[%c0, %c0_0, %c0_1] : memref<1x32x16xf32, #tpu.memory_space<vmem>>, vector<1x32x16xf32>
    %1 = vector.shape_cast %0 : vector<1x32x16xf32> to vector<32x16xf32>
    %c0_2 = arith.constant 0 : index
    %c0_3 = arith.constant 0 : index
    %c0_4 = arith.constant 0 : index
    %2 = vector.load %arg2[%c0_2, %c0_3, %c0_4] : memref<3x32x32xf32, #tpu.memory_space<vmem>>, vector<1x16x32xf32>
    %3 = vector.shape_cast %2 : vector<1x16x32xf32> to vector<16x32xf32>
    %c0_5 = arith.constant 0 : index
    %c0_6 = arith.constant 0 : index
    %c0_7 = arith.constant 0 : index
    %4 = vector.load %arg3[%c0_5, %c0_6, %c0_7] : memref<3x8x32xf32, #tpu.memory_space<vmem>>, vector<1x8x32xf32>
    %5 = vector.shape_cast %4 : vector<1x8x32xf32> to vector<8x32xf32>
    %6 = vector.extract_strided_slice %5 {offsets = [0, 0], sizes = [1, 32], strides = [1, 1]} : vector<8x32xf32> to vector<1x32xf32>
    %7 = vector.extract_strided_slice %5 {offsets = [1, 0], sizes = [1, 32], strides = [1, 1]} : vector<8x32xf32> to vector<1x32xf32>
    %8 = vector.extract_strided_slice %5 {offsets = [2, 0], sizes = [1, 32], strides = [1, 1]} : vector<8x32xf32> to vector<1x32xf32>
    %9 = vector.extract_strided_slice %5 {offsets = [3, 0], sizes = [1, 32], strides = [1, 1]} : vector<8x32xf32> to vector<1x32xf32>
    %cst = arith.constant dense<0.000000e+00> : vector<32x32xf32>
    %10 = tpu.matmul %1, %3, %cst {dimension_numbers = #tpu.dot_dimension_numbers<[1], [0], [0], [1], [0, 0, 1, 1], [], []>} : vector<32x16xf32>, vector<16x32xf32>, vector<32x32xf32> -> vector<32x32xf32>
    %11 = vector.broadcast %6 : vector<1x32xf32> to vector<32x32xf32>
    %12 = arith.addf %10, %11 : vector<32x32xf32>
    %cst_8 = arith.constant dense<0.000000e+00> : vector<32xf32>
    %13 = vector.multi_reduction <add>, %12, %cst_8 [0] : vector<32x32xf32> to vector<32xf32>
    %14 = vector.shape_cast %13 : vector<32xf32> to vector<1x32xf32>
    %cst_9 = arith.constant 3.200000e+01 : f32
    %15 = vector.broadcast %cst_9 : f32 to vector<1x32xf32>
    %16 = arith.divf %14, %15 : vector<1x32xf32>
    %17 = arith.mulf %12, %12 : vector<32x32xf32>
    %cst_10 = arith.constant dense<0.000000e+00> : vector<32xf32>
    %18 = vector.multi_reduction <add>, %17, %cst_10 [0] : vector<32x32xf32> to vector<32xf32>
    %19 = vector.shape_cast %18 : vector<32xf32> to vector<1x32xf32>
    %cst_11 = arith.constant 3.200000e+01 : f32
    %20 = vector.broadcast %cst_11 : f32 to vector<1x32xf32>
    %21 = arith.divf %19, %20 : vector<1x32xf32>
    %cst_12 = arith.constant 2.000000e+00 : f32
    %22 = vector.broadcast %cst_12 : f32 to vector<1x32xf32>
    %23 = arith.subf %22, %9 : vector<1x32xf32>
    %24 = arith.mulf %9, %23 : vector<1x32xf32>
    %25 = arith.mulf %16, %16 : vector<1x32xf32>
    %26 = arith.mulf %24, %25 : vector<1x32xf32>
    %27 = arith.subf %21, %26 : vector<1x32xf32>
    %28 = arith.mulf %16, %9 : vector<1x32xf32>
    %29 = vector.broadcast %28 : vector<1x32xf32> to vector<32x32xf32>
    %30 = arith.subf %12, %29 : vector<32x32xf32>
    %cst_13 = arith.constant 9.99999974E-6 : f32
    %31 = vector.broadcast %cst_13 : f32 to vector<1x32xf32>
    %32 = arith.addf %27, %31 : vector<1x32xf32>
    %33 = math.rsqrt %32 : vector<1x32xf32>
    %34 = vector.broadcast %7 : vector<1x32xf32> to vector<32x32xf32>
    %35 = arith.mulf %34, %30 : vector<32x32xf32>
    %36 = vector.broadcast %33 : vector<1x32xf32> to vector<32x32xf32>
    %37 = arith.mulf %35, %36 : vector<32x32xf32>
    %38 = vector.broadcast %8 : vector<1x32xf32> to vector<32x32xf32>
    %39 = arith.addf %37, %38 : vector<32x32xf32>
    %cst_14 = arith.constant 0.000000e+00 : f32
    %40 = vector.broadcast %cst_14 : f32 to vector<32x32xf32>
    %41 = arith.maximumf %39, %40 : vector<32x32xf32>
    %cst_15 = arith.constant 9.99999974E-6 : f32
    %42 = vector.broadcast %cst_15 : f32 to vector<32x32xf32>
    %43 = arith.addf %41, %42 : vector<32x32xf32>
    %c1 = arith.constant 1 : index
    %c0_16 = arith.constant 0 : index
    %c0_17 = arith.constant 0 : index
    %44 = vector.load %arg2[%c1, %c0_16, %c0_17] : memref<3x32x32xf32, #tpu.memory_space<vmem>>, vector<1x32x32xf32>
    %45 = vector.shape_cast %44 : vector<1x32x32xf32> to vector<32x32xf32>
    %c1_18 = arith.constant 1 : index
    %c0_19 = arith.constant 0 : index
    %c0_20 = arith.constant 0 : index
    %46 = vector.load %arg3[%c1_18, %c0_19, %c0_20] : memref<3x8x32xf32, #tpu.memory_space<vmem>>, vector<1x8x32xf32>
    %47 = vector.shape_cast %46 : vector<1x8x32xf32> to vector<8x32xf32>
    %48 = vector.extract_strided_slice %47 {offsets = [0, 0], sizes = [1, 32], strides = [1, 1]} : vector<8x32xf32> to vector<1x32xf32>
    %49 = vector.extract_strided_slice %47 {offsets = [1, 0], sizes = [1, 32], strides = [1, 1]} : vector<8x32xf32> to vector<1x32xf32>
    %50 = vector.extract_strided_slice %47 {offsets = [2, 0], sizes = [1, 32], strides = [1, 1]} : vector<8x32xf32> to vector<1x32xf32>
    %51 = vector.extract_strided_slice %47 {offsets = [3, 0], sizes = [1, 32], strides = [1, 1]} : vector<8x32xf32> to vector<1x32xf32>
    %cst_21 = arith.constant dense<0.000000e+00> : vector<32x32xf32>
    %52 = tpu.matmul %43, %45, %cst_21 {dimension_numbers = #tpu.dot_dimension_numbers<[1], [0], [0], [1], [0, 0, 1, 1], [], []>} : vector<32x32xf32>, vector<32x32xf32>, vector<32x32xf32> -> vector<32x32xf32>
    %53 = vector.broadcast %48 : vector<1x32xf32> to vector<32x32xf32>
    %54 = arith.addf %52, %53 : vector<32x32xf32>
    %cst_22 = arith.constant dense<0.000000e+00> : vector<32xf32>
    %55 = vector.multi_reduction <add>, %54, %cst_22 [0] : vector<32x32xf32> to vector<32xf32>
    %56 = vector.shape_cast %55 : vector<32xf32> to vector<1x32xf32>
    %cst_23 = arith.constant 3.200000e+01 : f32
    %57 = vector.broadcast %cst_23 : f32 to vector<1x32xf32>
    %58 = arith.divf %56, %57 : vector<1x32xf32>
    %59 = arith.mulf %54, %54 : vector<32x32xf32>
    %cst_24 = arith.constant dense<0.000000e+00> : vector<32xf32>
    %60 = vector.multi_reduction <add>, %59, %cst_24 [0] : vector<32x32xf32> to vector<32xf32>
    %61 = vector.shape_cast %60 : vector<32xf32> to vector<1x32xf32>
    %cst_25 = arith.constant 3.200000e+01 : f32
    %62 = vector.broadcast %cst_25 : f32 to vector<1x32xf32>
    %63 = arith.divf %61, %62 : vector<1x32xf32>
    %cst_26 = arith.constant 2.000000e+00 : f32
    %64 = vector.broadcast %cst_26 : f32 to vector<1x32xf32>
    %65 = arith.subf %64, %51 : vector<1x32xf32>
    %66 = arith.mulf %51, %65 : vector<1x32xf32>
    %67 = arith.mulf %58, %58 : vector<1x32xf32>
    %68 = arith.mulf %66, %67 : vector<1x32xf32>
    %69 = arith.subf %63, %68 : vector<1x32xf32>
    %70 = arith.mulf %58, %51 : vector<1x32xf32>
    %71 = vector.broadcast %70 : vector<1x32xf32> to vector<32x32xf32>
    %72 = arith.subf %54, %71 : vector<32x32xf32>
    %cst_27 = arith.constant 9.99999974E-6 : f32
    %73 = vector.broadcast %cst_27 : f32 to vector<1x32xf32>
    %74 = arith.addf %69, %73 : vector<1x32xf32>
    %75 = math.rsqrt %74 : vector<1x32xf32>
    %76 = vector.broadcast %49 : vector<1x32xf32> to vector<32x32xf32>
    %77 = arith.mulf %76, %72 : vector<32x32xf32>
    %78 = vector.broadcast %75 : vector<1x32xf32> to vector<32x32xf32>
    %79 = arith.mulf %77, %78 : vector<32x32xf32>
    %80 = vector.broadcast %50 : vector<1x32xf32> to vector<32x32xf32>
    %81 = arith.addf %79, %80 : vector<32x32xf32>
    %cst_28 = arith.constant 0.000000e+00 : f32
    %82 = vector.broadcast %cst_28 : f32 to vector<32x32xf32>
    %83 = arith.maximumf %81, %82 : vector<32x32xf32>
    %cst_29 = arith.constant 9.99999974E-6 : f32
    %84 = vector.broadcast %cst_29 : f32 to vector<32x32xf32>
    %85 = arith.addf %83, %84 : vector<32x32xf32>
    %c2 = arith.constant 2 : index
    %c0_30 = arith.constant 0 : index
    %c0_31 = arith.constant 0 : index
    %86 = vector.load %arg2[%c2, %c0_30, %c0_31] : memref<3x32x32xf32, #tpu.memory_space<vmem>>, vector<1x32x32xf32>
    %87 = vector.shape_cast %86 : vector<1x32x32xf32> to vector<32x32xf32>
    %c2_32 = arith.constant 2 : index
    %c0_33 = arith.constant 0 : index
    %c0_34 = arith.constant 0 : index
    %88 = vector.load %arg3[%c2_32, %c0_33, %c0_34] : memref<3x8x32xf32, #tpu.memory_space<vmem>>, vector<1x1x32xf32>
    %89 = vector.shape_cast %88 : vector<1x1x32xf32> to vector<1x32xf32>
    %cst_35 = arith.constant dense<0.000000e+00> : vector<32x32xf32>
    %90 = tpu.matmul %85, %87, %cst_35 {dimension_numbers = #tpu.dot_dimension_numbers<[1], [0], [0], [1], [0, 0, 1, 1], [], []>} : vector<32x32xf32>, vector<32x32xf32>, vector<32x32xf32> -> vector<32x32xf32>
    %91 = vector.broadcast %89 : vector<1x32xf32> to vector<32x32xf32>
    %92 = arith.addf %90, %91 : vector<32x32xf32>
    %93 = vector.extract_strided_slice %92 {offsets = [0, 0], sizes = [32, 8], strides = [1, 1]} : vector<32x32xf32> to vector<32x8xf32>
    %c0_36 = arith.constant 0 : index
    %c0_37 = arith.constant 0 : index
    %c0_38 = arith.constant 0 : index
    %94 = vector.load %arg4[%c0_36, %c0_37, %c0_38] : memref<1x32x8xf32, #tpu.memory_space<vmem>>, vector<1x32x8xf32>
    %95 = vector.shape_cast %94 : vector<1x32x8xf32> to vector<32x8xf32>
    %96 = vector.shape_cast %93 : vector<32x8xf32> to vector<1x32x8xf32>
    tpu.vector_store %arg4[%c0_36, %c0_37, %c0_38], %96 {strides = array<i32>} : memref<1x32x8xf32, #tpu.memory_space<vmem>>, vector<1x32x8xf32>,
    return
  }
  func.func @transform_0(%arg0: i32) -> (i32, i32, i32) {
    %c0_i32 = arith.constant 0 : i32
    %c0_i32_0 = arith.constant 0 : i32
    %c0_i32_1 = arith.constant 0 : i32
    return %arg0, %c0_i32, %c0_i32_0 : i32, i32, i32
  }
  func.func @transform_1(%arg0: i32) -> (i32, i32, i32) {
    %c0_i32 = arith.constant 0 : i32
    %c0_i32_0 = arith.constant 0 : i32
    %c0_i32_1 = arith.constant 0 : i32
    %c0_i32_2 = arith.constant 0 : i32
    return %c0_i32, %c0_i32_0, %c0_i32_1 : i32, i32, i32
  }
  func.func @transform_2(%arg0: i32) -> (i32, i32, i32) {
    %c0_i32 = arith.constant 0 : i32
    %c0_i32_0 = arith.constant 0 : i32
    %c0_i32_1 = arith.constant 0 : i32
    %c0_i32_2 = arith.constant 0 : i32
    return %c0_i32, %c0_i32_0, %c0_i32_1 : i32, i32, i32
  }
  func.func @transform_3(%arg0: i32) -> (i32, i32, i32) {
    %c0_i32 = arith.constant 0 : i32
    %c0_i32_0 = arith.constant 0 : i32
    %c0_i32_1 = arith.constant 0 : i32
    return %arg0, %c0_i32, %c0_i32_0 : i32, i32, i32
  }
}

</mosaic_0001>

<bundles_post_ra>
// kernel: mlp_forward_fused.1
= control target key start
LH: loop header
LB: loop body
LE: loop exit
PB: predicated region body
PF: predicated region fallthrough
CT: control target
= control target key end

     0   :  { %8 = vsyncpa [#allocation3], 0  ;;  %s949_s12 = smov 0   ;;  %s1090_s0 = inlined_call_operand.vmem [shape: f32[2,32,16], index: 0, kind: input, shape index: {}]   ;;  %s1091_s1 = inlined_call_operand.vmem [shape: f32[3,32,32], index: 1, kind: input, shape index: {}]   ;;  %s1092_s2 = inlined_call_operand.hbm [shape: f32[3,8,32], index: 2, kind: input, shape index: {}]   ;;  %s1093_s3 = inlined_call_operand.vmem [shape: f32[2,32,8], index: 3, kind: output, shape index: {}]  }
   0x1 LB: > { %s955_s13 = sadd.s32 4294967295, %s924_s12   ;;  %p747_p0 = scmp.ge.s32.totalorder %s924_s12, 1  ;;  %s924_s12 = sphi %s949_s12, %s14_s12  }
   0x2   : > { %p113_p1 = scmp.lt.s32.totalorder %s924_s12, 3  ;;  %s926_s14 = smov [#allocation2]  }
   0x3   : > { %s128_s15 = sshll.u32 %s926_s14, 4  ;;  %p1094_p3 = scmp.eq.s32.totalorder %s955_s13, 0  ;;  %s129_s15 = int_to_ptr.vmem [resolvable:$true] %s128_s15 }
   0x4   : > { %p959_p2 = pnand %p747_p0, %p113_p1  ;;  %s886_s20 = scalar_lea.hbm %s1092_s2, 384 }
   0x5   : > { %p887_p6 = scmp.ne.s32.totalorder %s1092_s2, %s886_s20  ;;  %p893_p10 = scmp.lt.u32.totalorder %s886_s20, %s1092_s2 }
   0x6   : > { %s1096_s16 = scalar_select %p959_p2, 1, 0 }
   0x7   : > { %p865_p4 = pneg %p959_p2 }
   0x9   : > { %p968_p5 = pnand %p1094_p3, %p865_p4 }
   0xb   : > { %p888_p7 = pneg %p968_p5 }
   0xd   : > { %p889_p8 = pnand %p888_p7, %p887_p6 }
   0xf   : > { %p890_p9 = pneg %p889_p8 }
  0x11   : > { %p895_p11 = pnand %p893_p10, %p890_p9 }
  0x13   : > { %898 = shalt.err (!%p895_p11)
}
  0x14   : > { %s899_s25 = scalar_lea.vmem %s129_s15, 384  ;;  %p907_p1 = scmp.lt.s32.totalorder %s129_s15, %s129_s15 }
  0x15   : > { %p900_p12 = scmp.ne.s32.totalorder %s129_s15, %s899_s25  ;;  %p908_p4 = scmp.lt.s32.totalorder %s899_s25, %s899_s25 }
  0x17   : > { %p902_p13 = pnand %p900_p12, %p888_p7  ;;  %p909_p3 = por %p908_p4, %p907_p1 }
  0x19   : > { %p903_p0 = pneg %p902_p13 }
  0x1b   : > { %p910_p2 = pnand %p909_p3, %p903_p0 }
  0x1d   : > { %913 = shalt.err (!%p910_p2)
}
  0x1e   : > { %s927_s26 = smov 128   ;;  %s928_s27 = smov 8  }
  0x1f   : > { %868 = dma.hbm_to_vmem [thread:$0]  (!%p968_p5), %s1092_s2, 384, %s129_s15, [#allocation3], %s927_s26, %s927_s26, %s928_s27  }
  0x20   : > { %p1098_p6 = scmp.ne.s32.totalorder %s1096_s16, 0 }
  0x21   : > { %p1099_p8 = scmp.eq.s32.totalorder (!%p1098_p6), %s955_s13, 0 }
  0x22   : > { %152 = sbr.rel (%p1098_p6) target bundleno = 805 (0x325), region = 32 }
  0x29   : > { %919 = dma.done.wait (%p1099_p8), [#allocation3], 384   ;;  %p1100_p7 = pmov %p1099_p8 }
  0x2a   : > { %p176_p2 = scmp.lt.s32.totalorder %s955_s13, 1  ;;  %vm197_vm0 = vcmask 130048   ;;  %v190_v0 = vld [vmem:[%s1091_s1] sm:$0xff]  ;;  %v191_v1 = vld [vmem:[%s1091_s1 + $0x8] sm:$0xff]  ;;  %v762_v10 = vld [vmem:[%s1091_s1 + $0x30] sm:$0xff]  ;;  %v193_v13 = vlaneseq  ;;  %vm295_vm1 = vcmask 261120  }
  0x2b   : > { %921 = vsyncadd (%p1100_p7), [#allocation3], 4294966912  ;;  %v841_v3 = vpack.c.bf16 %v191_v1, %v190_v0  ;;  %v760_v7 = vld [vmem:[%s1091_s1 + $0x20] sm:$0xff]  ;;  %v761_v8 = vld [vmem:[%s1091_s1 + $0x28] sm:$0xff]  ;;  %vm673_vm2 = vcmask 64512  }
  0x2c   : > { %s1102_s13 = smov (!%p176_p2, %s955_s13), 1  ;;  %v845_v9 = vpack.c.bf16 %v761_v8, %v760_v7  ;;  %v763_v11 = vld [vmem:[%s1091_s1 + $0x38] sm:$0xff]  ;;  %v1022_v14 = vshrl.u32 %v193_v13, 7  ;;  %v192_v16 = vld [vmem:[#allocation2] sm:$0xff] }
  0x2d   : > { %s779_s30 = sshll.u32 %s1102_s13, 5  ;;  %842 = vmatprep.subr.bf16.mxu0 %v841_v3  ;;  %v849_v12 = vpack.c.bf16 %v763_v11, %v762_v10  ;;  %v329_v53 = vsub.f32 2.0, %v192_v16 }
  0x2e   : > { %s180_s6 = scalar_lea.vmem %s1090_s0, %s779_s30  ;;  %844 = vmatpush3.bf16.msra.mxu0 %v841_v3  ;;  %846 = vmatprep.subr.bf16.mxu1 %v845_v9  ;;  %v195_v15 = vsub.s32 0, %v1022_v14  ;;  %v1036_v59 = vsub.s32 3, %v1022_v14  ;;  %v347_v7 = vsub.s32 1, %v1022_v14  ;;  %s185_s5 = scalar_lea.vmem %s1093_s3, %s779_s30 }
  0x2f   : > { %v186_v2 = vld [vmem:[%s180_s6] sm:$0xff]  ;;  %v187_v4 = vld [vmem:[%s180_s6 + $0x8] sm:$0xff]  ;;  %v188_v5 = vld [vmem:[%s180_s6 + $0x10] sm:$0xff]  ;;  %848 = vmatpush3.bf16.msra.mxu1 %v845_v9  ;;  %v330_v58 = vmul.f32 %v329_v53, %v192_v16  ;;  %v363_v9 = vsub.s32 2, %v1022_v14 }
  0x30   : > { %807 = vmatprep.mubr.msk.f32.mxu0 %vm197_vm0, %v186_v2  ;;  %v189_v6 = vld [vmem:[%s180_s6 + $0x18] sm:$0xff]  ;;  %850 = vmatprep.subr.bf16.mxu1 %v849_v12  ;;  %v196_v17 = vrot.slane %v192_v16, %v195_v15  ;;  %v348_v8 = vrot.slane %v192_v16, %v347_v7 }
  0x31   : > { %808 = vmatmul.mubr.msk.f32.vlgmr.msra.gmra.mrb[0].mxu0 %vm197_vm0, %v187_v4 }
  0x32   : > { %810 = vmatprep.mubr.msk.f32.mxu0 %vm197_vm0, %v188_v5 }
  0x33   : > { %852 = vmatpush3.bf16.msra.mxu1 %v849_v12  ;;  %v364_v12 = vrot.slane %v192_v16, %v363_v9 }
  0x35   : > { %811 = vmatmul.mubr.msk.f32.gmra.mrb[2].mxu0 %vm197_vm0, %v189_v6 }
 0x104   : > { %v809_v18 = vpop.f32.mrb[0].mxu0 }
 0x105   : > { %v282_v19 = vadd.f32 %v809_v18, %v196_v17  ;;  %v276_v20 = vpop.f32.mrb[1].mxu0 }
 0x106   : > { %v277_v21 = vadd.f32 %v276_v20, %v196_v17 }
 0x107   : > { %v297_v22 = vsel %vm295_vm1, %v282_v19, 0.0  ;;  %v312_v23 = vmul.f32 %v282_v19, %v282_v19 }
 0x108   : > { %v296_v24 = vsel %vm295_vm1, %v277_v21, 0.0  ;;  %v311_v25 = vmul.f32 %v277_v21, %v277_v21  ;;  %v812_v26 = vpop.f32.mrb[2].mxu0 }
 0x109   : > { %v316_v27 = vsel %vm295_vm1, %v312_v23, 0.0  ;;  %v298_v28 = vadd.f32 %v297_v22, %v296_v24  ;;  %v292_v29 = vadd.f32 %v812_v26, %v196_v17  ;;  %v286_v30 = vpop.f32.mrb[3].mxu0 }
 0x10a   : > { %v315_v31 = vsel %vm295_vm1, %v311_v25, 0.0  ;;  %v287_v32 = vadd.f32 %v286_v30, %v196_v17 }
 0x10b   : > { %v317_v33 = vadd.f32 %v316_v27, %v315_v31  ;;  %v314_v34 = vmul.f32 %v292_v29, %v292_v29  ;;  %v301_v38 = vsel %vm295_vm1, %v292_v29, 0.0 }
 0x10c   : > { %v299_v35 = vsel %vm295_vm1, %v287_v32, 0.0  ;;  %v313_v36 = vmul.f32 %v287_v32, %v287_v32 }
 0x10d   : > { %v300_v37 = vadd.f32 %v299_v35, %v298_v28  ;;  %v320_v42 = vsel %vm295_vm1, %v314_v34, 0.0  ;;  %v768_v35 = vld [vmem:[%s1091_s1 + $0x40] sm:$0xff] }
 0x10e   : > { %v318_v39 = vsel %vm295_vm1, %v313_v36, 0.0  ;;  %v769_v36 = vld [vmem:[%s1091_s1 + $0x48] sm:$0xff] }
 0x10f   : > { %v302_v40 = vadd.f32 %v301_v38, %v300_v37  ;;  %v319_v41 = vadd.f32 %v318_v39, %v317_v33  ;;  %v853_v37 = vpack.c.bf16 %v769_v36, %v768_v35  ;;  %v770_v38 = vld [vmem:[%s1091_s1 + $0x50] sm:$0xff]  ;;  %v771_v39 = vld [vmem:[%s1091_s1 + $0x58] sm:$0xff] }
 0x111   : > { %v303_v43 = vrot.slane %v302_v40, 4  ;;  %v321_v44 = vadd.f32 %v320_v42, %v319_v41  ;;  %854 = vmatprep.subr.bf16.mxu0 %v853_v37  ;;  %v383_v41 = vld [vmem:[#allocation2 + $0x8] sm:$0xff] }
 0x112   : > { %856 = vmatpush3.bf16.msra.mxu0 %v853_v37  ;;  %v387_v42 = vrot.slane %v383_v41, %v195_v15  ;;  %v536_v35 = vrot.slane %v383_v41, %v347_v7  ;;  %v552_v37 = vrot.slane %v383_v41, %v363_v9 }
 0x113   : > { %v304_v45 = vadd.f32 %v303_v43, %v302_v40  ;;  %v322_v46 = vrot.slane %v321_v44, 4  ;;  %v857_v40 = vpack.c.bf16 %v771_v39, %v770_v38 }
 0x115   : > { %v305_v47 = vrot.slane %v304_v45, 2  ;;  %v323_v48 = vadd.f32 %v322_v46, %v321_v44  ;;  %858 = vmatprep.subr.bf16.mxu0 %v857_v40 }
 0x116   : > { %860 = vmatpush3.bf16.msra.mxu0 %v857_v40 }
 0x117   : > { %v306_v49 = vadd.f32 %v305_v47, %v304_v45  ;;  %v324_v50 = vrot.slane %v323_v48, 2 }
 0x119   : > { %v307_v51 = vrot.slane %v306_v49, 1  ;;  %v325_v52 = vadd.f32 %v324_v50, %v323_v48 }
 0x11b   : > { %v308_v54 = vadd.f32 %v307_v51, %v306_v49  ;;  %v326_v55 = vrot.slane %v325_v52, 1 }
 0x11d   : > { %v310_v56 = vmul.f32 0.03125, %v308_v54  ;;  %v327_v57 = vadd.f32 %v326_v55, %v325_v52 }
 0x11f   : > { %v331_v60 = vmul.f32 %v310_v56, %v310_v56  ;;  %v334_v61 = vmul.f32 %v310_v56, %v192_v16  ;;  %v328_v62 = vmul.f32 0.03125, %v327_v57 }
 0x121   : > { %v332_v63 = vmul.f32 %v331_v60, %v330_v58  ;;  %v338_v0 = vrot.slane %v334_v61, %v1036_v59 }
 0x123   : > { %v333_v1 = vsub.f32 %v328_v62, %v332_v63  ;;  %v341_v2 = vsub.f32 %v287_v32, %v338_v0  ;;  %v339_v3 = vsub.f32 %v277_v21, %v338_v0  ;;  %v340_v4 = vsub.f32 %v282_v19, %v338_v0 }
 0x124   : > { %v342_v5 = vsub.f32 %v292_v29, %v338_v0 }
 0x125   : > { %v343_v6 = vadd.f32 1e-05, %v333_v1  ;;  %v351_v11 = vmul.f32 %v348_v8, %v341_v2  ;;  %v349_v17 = vmul.f32 %v348_v8, %v339_v3  ;;  %v350_v18 = vmul.f32 %v348_v8, %v340_v4 }
 0x126   : > { %v352_v19 = vmul.f32 %v348_v8, %v342_v5 }
 0x127   : > { %882 = vrsqrt.f32 %v343_v6 }
 0x131   : > { %v883_v10 = vpop.eup %882 }
 0x132   : > { %v356_v13 = vrot.slane %v883_v10, %v1036_v59 }
 0x134   : > { %v359_v20 = vmul.f32 %v356_v13, %v351_v11  ;;  %v357_v21 = vmul.f32 %v356_v13, %v349_v17  ;;  %v358_v22 = vmul.f32 %v356_v13, %v350_v18  ;;  %v360_v23 = vmul.f32 %v356_v13, %v352_v19 }
 0x135   : > { %v517_v19 = vsub.f32 2.0, %v383_v41 }
 0x136   : > { %v365_v24 = vadd.f32 %v364_v12, %v357_v21  ;;  %v366_v25 = vadd.f32 %v364_v12, %v358_v22  ;;  %v367_v26 = vadd.f32 %v364_v12, %v359_v20  ;;  %v368_v27 = vadd.f32 %v364_v12, %v360_v23 }
 0x138   : > { %v369_v28 = vmax.f32 %v365_v24, 0.0  ;;  %v370_v29 = vmax.f32 %v366_v25, 0.0  ;;  %v371_v30 = vmax.f32 %v367_v26, 0.0  ;;  %v372_v33 = vmax.f32 %v368_v27, 0.0 }
 0x139   : > { %v518_v24 = vmul.f32 %v517_v19, %v383_v41 }
 0x13a   : > { %v373_v31 = vadd.f32 1e-05, %v369_v28  ;;  %v374_v32 = vadd.f32 1e-05, %v370_v29  ;;  %v375_v16 = vadd.f32 1e-05, %v371_v30 }
 0x13b   : > { %v376_v34 = vadd.f32 1e-05, %v372_v33 }
 0x13c   : > { %821 = vmatprep.mubr.msk.f32.mxu1 %vm295_vm1, %v373_v31 }
 0x13d   : > { %822 = vmatmul.mubr.msk.f32.vlgmr.msra.gmra.mrb[0].mxu1 %vm295_vm1, %v374_v32 }
 0x13e   : > { %824 = vmatprep.mubr.msk.f32.mxu1 %vm295_vm1, %v375_v16 }
 0x141   : > { %825 = vmatmul.mubr.msk.f32.gmra.mrb[2].mxu1 %vm295_vm1, %v376_v34 }
 0x210   : > { %v823_v43 = vpop.f32.mrb[0].mxu1 }
 0x211   : > { %v472_v44 = vadd.f32 %v823_v43, %v387_v42  ;;  %v466_v45 = vpop.f32.mrb[1].mxu1 }
 0x212   : > { %v467_v46 = vadd.f32 %v466_v45, %v387_v42 }
 0x213   : > { %v486_v47 = vsel %vm295_vm1, %v472_v44, 0.0  ;;  %v500_v48 = vmul.f32 %v472_v44, %v472_v44 }
 0x214   : > { %v485_v49 = vsel %vm295_vm1, %v467_v46, 0.0  ;;  %v499_v50 = vmul.f32 %v467_v46, %v467_v46  ;;  %v826_v51 = vpop.f32.mrb[2].mxu1 }
 0x215   : > { %v504_v52 = vsel %vm295_vm1, %v500_v48, 0.0  ;;  %v487_v53 = vadd.f32 %v486_v47, %v485_v49  ;;  %v482_v54 = vadd.f32 %v826_v51, %v387_v42  ;;  %v476_v55 = vpop.f32.mrb[3].mxu1 }
 0x216   : > { %v503_v56 = vsel %vm295_vm1, %v499_v50, 0.0  ;;  %v477_v57 = vadd.f32 %v476_v55, %v387_v42  ;;  %v772_v55 = vld [vmem:[#allocation2 + $0x10] ss:$0 sm:$0xff] }
 0x217   : > { %v505_v15 = vadd.f32 %v504_v52, %v503_v56  ;;  %v502_v58 = vmul.f32 %v482_v54, %v482_v54  ;;  %v490_v63 = vsel %vm295_vm1, %v482_v54, 0.0 }
 0x218   : > { %v488_v60 = vsel %vm295_vm1, %v477_v57, 0.0  ;;  %v501_v61 = vmul.f32 %v477_v57, %v477_v57 }
 0x219   : > { %v489_v62 = vadd.f32 %v488_v60, %v487_v53  ;;  %v508_v3 = vsel %vm295_vm1, %v502_v58, 0.0 }
 0x21a   : > { %v506_v0 = vsel %vm295_vm1, %v501_v61, 0.0 }
 0x21b   : > { %v491_v1 = vadd.f32 %v490_v63, %v489_v62  ;;  %v507_v2 = vadd.f32 %v506_v0, %v505_v15 }
 0x21d   : > { %v492_v4 = vrot.slane %v491_v1, 4  ;;  %v509_v5 = vadd.f32 %v508_v3, %v507_v2 }
 0x21f   : > { %v493_v6 = vadd.f32 %v492_v4, %v491_v1  ;;  %v510_v8 = vrot.slane %v509_v5, 4 }
 0x221   : > { %v494_v10 = vrot.slane %v493_v6, 2  ;;  %v511_v11 = vadd.f32 %v510_v8, %v509_v5 }
 0x223   : > { %v495_v12 = vadd.f32 %v494_v10, %v493_v6  ;;  %v512_v13 = vrot.slane %v511_v11, 2 }
 0x225   : > { %v496_v17 = vrot.slane %v495_v12, 1  ;;  %v513_v18 = vadd.f32 %v512_v13, %v511_v11 }
 0x227   : > { %v497_v20 = vadd.f32 %v496_v17, %v495_v12  ;;  %v514_v21 = vrot.slane %v513_v18, 1 }
 0x229   : > { %v498_v22 = vmul.f32 0.03125, %v497_v20  ;;  %v515_v23 = vadd.f32 %v514_v21, %v513_v18 }
 0x22b   : > { %v519_v25 = vmul.f32 %v498_v22, %v498_v22  ;;  %v522_v26 = vmul.f32 %v498_v22, %v383_v41  ;;  %v516_v27 = vmul.f32 0.03125, %v515_v23 }
 0x22d   : > { %v520_v28 = vmul.f32 %v519_v25, %v518_v24  ;;  %v526_v29 = vrot.slane %v522_v26, %v1036_v59 }
 0x22f   : > { %v521_v30 = vsub.f32 %v516_v27, %v520_v28  ;;  %v528_v31 = vsub.f32 %v472_v44, %v526_v29  ;;  %v529_v32 = vsub.f32 %v477_v57, %v526_v29  ;;  %v527_v33 = vsub.f32 %v467_v46, %v526_v29 }
 0x230   : > { %v530_v16 = vsub.f32 %v482_v54, %v526_v29 }
 0x231   : > { %v531_v34 = vadd.f32 1e-05, %v521_v30  ;;  %v539_v38 = vmul.f32 %v536_v35, %v529_v32  ;;  %v537_v40 = vmul.f32 %v536_v35, %v527_v33  ;;  %v538_v42 = vmul.f32 %v536_v35, %v528_v31 }
 0x232   : > { %v540_v43 = vmul.f32 %v536_v35, %v530_v16 }
 0x233   : > { %884 = vrsqrt.f32 %v531_v34 }
 0x23d   : > { %v885_v36 = vpop.eup %884 }
 0x23e   : > { %v544_v39 = vrot.slane %v885_v36, %v1036_v59 }
 0x240   : > { %v547_v45 = vmul.f32 %v544_v39, %v539_v38  ;;  %v545_v44 = vmul.f32 %v544_v39, %v537_v40  ;;  %v546_v47 = vmul.f32 %v544_v39, %v538_v42  ;;  %v548_v46 = vmul.f32 %v544_v39, %v540_v43 }
 0x242   : > { %v553_v48 = vadd.f32 %v552_v37, %v545_v44  ;;  %v554_v49 = vadd.f32 %v552_v37, %v546_v47  ;;  %v555_v50 = vadd.f32 %v552_v37, %v547_v45  ;;  %v556_v51 = vadd.f32 %v552_v37, %v548_v46 }
 0x244   : > { %v557_v7 = vmax.f32 %v553_v48, 0.0  ;;  %v558_v52 = vmax.f32 %v554_v49, 0.0  ;;  %v559_v53 = vmax.f32 %v555_v50, 0.0  ;;  %v560_v41 = vmax.f32 %v556_v51, 0.0 }
 0x246   : > { %v561_v14 = vadd.f32 1e-05, %v557_v7  ;;  %v562_v9 = vadd.f32 1e-05, %v558_v52  ;;  %v563_v59 = vadd.f32 1e-05, %v559_v53 }
 0x247   : > { %v564_v54 = vadd.f32 1e-05, %v560_v41 }
 0x248   : > { %835 = vmatprep.mubr.msk.f32.mxu0 %vm295_vm1, %v561_v14 }
 0x249   : > { %836 = vmatmul.mubr.msk.f32.vlgmr.msra.gmra.mrb[4].mxu0 %vm295_vm1, %v562_v9 }
 0x24a   : > { %838 = vmatprep.mubr.msk.f32.mxu0 %vm295_vm1, %v563_v59 }
 0x24d   : > { %839 = vmatmul.mubr.msk.f32.gmra.mrb[6].mxu0 %vm295_vm1, %v564_v54 }
 0x31c   : > { %v837_v56 = vpop.f32.mrb[4].mxu0 }
 0x31d   : > { %v660_v57 = vadd.f32 %v837_v56, %v772_v55  ;;  %v654_v15 = vpop.f32.mrb[5].mxu0 }
 0x31e   : > { %v655_v58 = vadd.f32 %v772_v55, %v654_v15 }
 0x31f   : > { %675 = vst.msk [vmem:[%s185_s5 + $0x8] sm:$0xff] %vm673_vm2, %v660_v57 }
 0x320   : > { %674 = vst.msk [vmem:[%s185_s5] sm:$0xff] %vm673_vm2, %v655_v58  ;;  %v840_v60 = vpop.f32.mrb[6].mxu0 }
 0x321   : > { %v670_v61 = vadd.f32 %v840_v60, %v772_v55  ;;  %v664_v62 = vpop.f32.mrb[7].mxu0 }
 0x322   : > { %v665_v63 = vadd.f32 %v772_v55, %v664_v62 }
 0x323   : > { %677 = vst.msk [vmem:[%s185_s5 + $0x18] sm:$0xff] %vm673_vm2, %v670_v61 }
 0x324   : > { %676 = vst.msk [vmem:[%s185_s5 + $0x10] sm:$0xff] %vm673_vm2, %v665_v63 }
 0x325 PF: > { %s14_s12 = sadd.s32 1, %s924_s12  }
 0x326   : > { %p11_p3 = scmp.ge.s32.totalorder %s14_s12, 4  }
 0x328   :  { %13 = sbr.rel (!%p11_p3) target bundleno = 1 (0x1), region = 71 }
 0x32f   :  { %699 = vsyncpa [#allocation3], 1 }
 0x330   :  { %701 = vsyncpa [#allocation3 + $0x1], 1 }

</bundles_post_ra>
